<compile_context>
chip_gen: v7x
topology: tpu7x:2x2x1
jax: 0.10.0
libtpu: 0.0.40
codegen_flags: <defaults>
</compile_context>

<pallas_src>
import functools
import math

import jax
import jax.numpy as jnp
from jax import lax
from jax.experimental import pallas as pl
from jax.experimental.pallas import tpu as pltpu


def _shift_lanes(v, s):
    """Circular shift along the last axis: result[:, p] = v[:, (p + s) % n].

    `s` is a static Python int; lowers to two static lane slices + one
    concatenate (supported by Mosaic and by interpret mode). Wrap-around
    contributions are zeroed by the precomputed boundary masks.
    """
    n = v.shape[-1]
    s = s % n
    if s == 0:
        return v
    return jnp.concatenate([v[:, s:], v[:, :s]], axis=-1)


def _resblock_kernel(x_ref, mask_ref, w1_ref, b1_ref, w2_ref, b2_ref,
                     out_ref, xcol_ref, *, W, CP):
    """Shapes:
      x_ref / out_ref : (CP, BP)    activations, channels zero-padded to CP,
                                    batch folded into the lane axis (BP=B*H*W)
      mask_ref        : (9, BP)     per-tap 0/1 boundary masks (precomputed)
      w*_ref          : (CP, 9*CP)  im2col-flattened conv weights (tap-major,
                                    channel-minor), zero-padded
      b*_ref          : (CP, 1)     biases, zero-padded
      xcol_ref        : (9*CP, BP)  reused VMEM scratch for the im2col slab
    """
    x = x_ref[...]                                   # (CP, BP) f32

    # Tap order (ky-major, kx, channel-minor) must match the wrapper's weight
    # flattening. Center tap needs no boundary mask.
    taps = [(dy * W + dx, not (dy == 0 and dx == 0))
            for dy in (-1, 0, 1) for dx in (-1, 0, 1)]

    def conv3x3(v, w2d, bias):
        # Build the im2col slab in the aligned VMEM scratch: one full
        # (CP, BP) tile-aligned store per tap (no in-kernel concatenate of
        # 9 sub-tile chunks).
        for t, (s, needs_mask) in enumerate(taps):
            vv = _shift_lanes(v, s)                  # vv[:, p] = v[:, p + s]
            if needs_mask:
                vv = vv * mask_ref[pl.ds(t, 1), :]   # zero invalid / wrapped
            xcol_ref[pl.ds(t * CP, CP), :] = vv
        # One fused MXU matmul per conv: (CP, 9*CP) @ (9*CP, BP).
        return jnp.dot(w2d, xcol_ref[...],
                       preferred_element_type=jnp.float32) + bias

    h = conv3x3(x, w1_ref[...], b1_ref[...])         # conv1 (+bias)
    h = jnp.maximum(h, 0.0)                          # ReLU
    h = conv3x3(h, w2_ref[...], b2_ref[...])         # conv2 (+bias)
    out_ref[...] = (h + x).astype(out_ref.dtype)     # residual add


def resblock_pallas(x_nchw, w1, b1, w2, b2):
    """x_nchw: (B, C, H, W) f32. w*: (Cout, Cin, 3, 3) PyTorch OIHW. b*: (C,)."""
    B, C, H, W = x_nchw.shape
    P = H * W
    BP = B * P
    CP = ((C + 7) // 8) * 8          # pad channels to a full f32 sublane group
    dtype = x_nchw.dtype

    # Activations: (B, C, H, W) -> (C, B*H*W), batch folded into the lane axis
    # so both images share one matmul; channels zero-padded to CP so every
    # in-kernel tensor and scratch write is (8,128)-tile aligned.
    x_flat = jnp.transpose(x_nchw, (1, 0, 2, 3)).reshape(C, BP)
    x_pad = jnp.zeros((CP, BP), dtype).at[:C, :].set(x_flat)

    # Weights: OIHW -> (Cout, ky, kx, Cin), zero-pad both channel dims to CP,
    # flatten tap-major / channel-minor to match the kernel's im2col stacking.
    def prep_w(w):
        wt = jnp.transpose(w, (0, 2, 3, 1))                    # (Cout,3,3,Cin)
        wp = jnp.zeros((CP, 3, 3, CP), w.dtype).at[:C, :, :, :C].set(wt)
        return wp.reshape(CP, 9 * CP)

    def prep_b(b):
        return jnp.zeros((CP, 1), b.dtype).at[:C, 0].set(b)

    # Hoisted per-tap boundary masks (pure function of B, H, W). Row/col are
    # per-image (pos % P) so the masks also kill cross-image wrap-around of
    # the circular lane shift after the batch fold.
    pos = jnp.arange(BP, dtype=jnp.int32)
    q = pos % P
    row = q // W
    col = q % W
    masks = []
    for dy in (-1, 0, 1):
        for dx in (-1, 0, 1):
            ok = jnp.ones((BP,), dtype=jnp.bool_)
            if dy == -1:
                ok = ok & (row >= 1)
            elif dy == 1:
                ok = ok & (row <= H - 2)
            if dx == -1:
                ok = ok & (col >= 1)
            elif dx == 1:
                ok = ok & (col <= W - 2)
            masks.append(ok)
    mask = jnp.stack(masks, axis=0).astype(dtype)              # (9, BP) of 0/1

    kernel = functools.partial(_resblock_kernel, W=W, CP=CP)

    out_pad = pl.pallas_call(
        kernel,
        out_shape=jax.ShapeDtypeStruct((CP, BP), dtype),
        grid=(1,),                                   # single step: whole batch
        in_specs=[
            pl.BlockSpec((CP, BP), lambda i: (0, 0)),
            pl.BlockSpec((9, BP), lambda i: (0, 0)),
            pl.BlockSpec((CP, 9 * CP), lambda i: (0, 0)),
            pl.BlockSpec((CP, 1), lambda i: (0, 0)),
            pl.BlockSpec((CP, 9 * CP), lambda i: (0, 0)),
            pl.BlockSpec((CP, 1), lambda i: (0, 0)),
        ],
        out_specs=pl.BlockSpec((CP, BP), lambda i: (0, 0)),
        scratch_shapes=[pltpu.VMEM((9 * CP, BP), jnp.float32)],
    )(x_pad, mask, prep_w(w1), prep_b(b1), prep_w(w2), prep_b(b2))

    out = out_pad[:C, :].reshape(C, B, H, W)
    return jnp.transpose(out, (1, 0, 2, 3))


def resblock_reference(x_nchw, w1, b1, w2, b2):
    """Pure-JAX reference using lax.conv (NCHW, OIHW), matching PyTorch semantics."""
    dn = lax.conv_dimension_numbers(x_nchw.shape, w1.shape, ("NCHW", "OIHW", "NCHW"))
    c1 = lax.conv_general_dilated(x_nchw, w1, (1, 1), "SAME",
                                  dimension_numbers=dn,
                                  precision=lax.Precision.HIGHEST)
    c1 = jnp.maximum(c1 + b1[None, :, None, None], 0.0)
    c2 = lax.conv_general_dilated(c1, w2, (1, 1), "SAME",
                                  dimension_numbers=dn,
                                  precision=lax.Precision.HIGHEST)
    c2 = c2 + b2[None, :, None, None]
    return c2 + x_nchw


if __name__ == "__main__":
    B, C, H, W = 2, 4, 16, 16                                  # nFeat = 4
    key = jax.random.PRNGKey(0)
    kx, kw1, kb1, kw2, kb2 = jax.random.split(key, 5)

    x = jax.random.normal(kx, (B, C, H, W), dtype=jnp.float32)

    # Deterministic init mimicking PyTorch Conv2d default (uniform +/- 1/sqrt(fan_in)).
    fan_in = C * 3 * 3
    bound = 1.0 / math.sqrt(fan_in)
    w1 = jax.random.uniform(kw1, (C, C, 3, 3), jnp.float32, -bound, bound)
    b1 = jax.random.uniform(kb1, (C,), jnp.float32, -bound, bound)
    w2 = jax.random.uniform(kw2, (C, C, 3, 3), jnp.float32, -bound, bound)
    b2 = jax.random.uniform(kb2, (C,), jnp.float32, -bound, bound)

    out = jax.block_until_ready(resblock_pallas(x, w1, b1, w2, b2))
    ref = jax.block_until_ready(resblock_reference(x, w1, b1, w2, b2))

    assert out.shape == (B, C, H, W)
    max_err = float(jnp.max(jnp.abs(out - ref)))
    assert max_err < 1e-3, f"mismatch vs reference: max abs err {max_err}"

    print("KERNEL_OK")
</pallas_src>

<mosaic_0001>
module attributes {stable_mosaic.version = 11 : i64} {
  func.func @_resblock_kernel(%arg0: i32, %arg1: memref<8x512xf32, #tpu.memory_space<vmem>>, %arg2: memref<9x512xf32, #tpu.memory_space<vmem>>, %arg3: memref<8x72xf32, #tpu.memory_space<vmem>>, %arg4: memref<8x1xf32, #tpu.memory_space<vmem>>, %arg5: memref<8x72xf32, #tpu.memory_space<vmem>>, %arg6: memref<8x1xf32, #tpu.memory_space<vmem>>, %arg7: memref<8x512xf32, #tpu.memory_space<vmem>>, %arg8: memref<72x512xf32, #tpu.memory_space<vmem>>) attributes {dimension_semantics = [#tpu.dimension_semantics<arbitrary>], iteration_bounds = array<i64: 1>, scalar_prefetch = 0 : i64, scratch_operands = 1 : i64, tpu.core_type = #tpu.core_type<tc>, window_params = [{pipeline_mode = #tpu.pipeline_mode<synchronous>, transform_indices = @transform_0, window_bounds = array<i64: 8, 512>}, {pipeline_mode = #tpu.pipeline_mode<synchronous>, transform_indices = @transform_1, window_bounds = array<i64: 9, 512>}, {pipeline_mode = #tpu.pipeline_mode<synchronous>, transform_indices = @transform_2, window_bounds = array<i64: 8, 72>}, {pipeline_mode = #tpu.pipeline_mode<synchronous>, transform_indices = @transform_3, window_bounds = array<i64: 8, 1>}, {pipeline_mode = #tpu.pipeline_mode<synchronous>, transform_indices = @transform_4, window_bounds = array<i64: 8, 72>}, {pipeline_mode = #tpu.pipeline_mode<synchronous>, transform_indices = @transform_5, window_bounds = array<i64: 8, 1>}, {pipeline_mode = #tpu.pipeline_mode<synchronous>, transform_indices = @transform_6, window_bounds = array<i64: 8, 512>}]} {
    %c0 = arith.constant 0 : index
    %c0_0 = arith.constant 0 : index
    %0 = vector.load %arg1[%c0, %c0_0] : memref<8x512xf32, #tpu.memory_space<vmem>>, vector<8x512xf32>
    %c0_1 = arith.constant 0 : index
    %c0_2 = arith.constant 0 : index
    %1 = vector.load %arg3[%c0_1, %c0_2] : memref<8x72xf32, #tpu.memory_space<vmem>>, vector<8x72xf32>
    %c0_3 = arith.constant 0 : index
    %c0_4 = arith.constant 0 : index
    %2 = vector.load %arg4[%c0_3, %c0_4] : memref<8x1xf32, #tpu.memory_space<vmem>>, vector<8x1xf32>
    %3 = vector.extract_strided_slice %0 {offsets = [0, 495], sizes = [8, 17], strides = [1, 1]} : vector<8x512xf32> to vector<8x17xf32>
    %4 = vector.extract_strided_slice %0 {offsets = [0, 0], sizes = [8, 495], strides = [1, 1]} : vector<8x512xf32> to vector<8x495xf32>
    %5 = tpu.concatenate %3, %4 in 1 : vector<8x17xf32>, vector<8x495xf32> -> vector<8x512xf32>
    %c0_5 = arith.constant 0 : index
    %c0_6 = arith.constant 0 : index
    %6 = vector.load %arg2[%c0_5, %c0_6] : memref<9x512xf32, #tpu.memory_space<vmem>>, vector<1x512xf32>
    %7 = vector.broadcast %6 : vector<1x512xf32> to vector<8x512xf32>
    %8 = arith.mulf %5, %7 : vector<8x512xf32>
    %c0_7 = arith.constant 0 : index
    %c0_8 = arith.constant 0 : index
    %9 = vector.load %arg8[%c0_7, %c0_8] : memref<72x512xf32, #tpu.memory_space<vmem>>, vector<8x512xf32>
    tpu.vector_store %arg8[%c0_7, %c0_8], %8 {strides = array<i32>} : memref<72x512xf32, #tpu.memory_space<vmem>>, vector<8x512xf32>,
    %10 = vector.extract_strided_slice %0 {offsets = [0, 496], sizes = [8, 16], strides = [1, 1]} : vector<8x512xf32> to vector<8x16xf32>
    %11 = vector.extract_strided_slice %0 {offsets = [0, 0], sizes = [8, 496], strides = [1, 1]} : vector<8x512xf32> to vector<8x496xf32>
    %12 = tpu.concatenate %10, %11 in 1 : vector<8x16xf32>, vector<8x496xf32> -> vector<8x512xf32>
    %c1 = arith.constant 1 : index
    %c0_9 = arith.constant 0 : index
    %13 = vector.load %arg2[%c1, %c0_9] : memref<9x512xf32, #tpu.memory_space<vmem>>, vector<1x512xf32>
    %14 = vector.broadcast %13 : vector<1x512xf32> to vector<8x512xf32>
    %15 = arith.mulf %12, %14 : vector<8x512xf32>
    %c8 = arith.constant 8 : index
    %c0_10 = arith.constant 0 : index
    %16 = vector.load %arg8[%c8, %c0_10] : memref<72x512xf32, #tpu.memory_space<vmem>>, vector<8x512xf32>
    tpu.vector_store %arg8[%c8, %c0_10], %15 {strides = array<i32>} : memref<72x512xf32, #tpu.memory_space<vmem>>, vector<8x512xf32>,
    %17 = vector.extract_strided_slice %0 {offsets = [0, 497], sizes = [8, 15], strides = [1, 1]} : vector<8x512xf32> to vector<8x15xf32>
    %18 = vector.extract_strided_slice %0 {offsets = [0, 0], sizes = [8, 497], strides = [1, 1]} : vector<8x512xf32> to vector<8x497xf32>
    %19 = tpu.concatenate %17, %18 in 1 : vector<8x15xf32>, vector<8x497xf32> -> vector<8x512xf32>
    %c2 = arith.constant 2 : index
    %c0_11 = arith.constant 0 : index
    %20 = vector.load %arg2[%c2, %c0_11] : memref<9x512xf32, #tpu.memory_space<vmem>>, vector<1x512xf32>
    %21 = vector.broadcast %20 : vector<1x512xf32> to vector<8x512xf32>
    %22 = arith.mulf %19, %21 : vector<8x512xf32>
    %c16 = arith.constant 16 : index
    %c0_12 = arith.constant 0 : index
    %23 = vector.load %arg8[%c16, %c0_12] : memref<72x512xf32, #tpu.memory_space<vmem>>, vector<8x512xf32>
    tpu.vector_store %arg8[%c16, %c0_12], %22 {strides = array<i32>} : memref<72x512xf32, #tpu.memory_space<vmem>>, vector<8x512xf32>,
    %24 = vector.extract_strided_slice %0 {offsets = [0, 511], sizes = [8, 1], strides = [1, 1]} : vector<8x512xf32> to vector<8x1xf32>
    %25 = vector.extract_strided_slice %0 {offsets = [0, 0], sizes = [8, 511], strides = [1, 1]} : vector<8x512xf32> to vector<8x511xf32>
    %26 = tpu.concatenate %24, %25 in 1 : vector<8x1xf32>, vector<8x511xf32> -> vector<8x512xf32>
    %c3 = arith.constant 3 : index
    %c0_13 = arith.constant 0 : index
    %27 = vector.load %arg2[%c3, %c0_13] : memref<9x512xf32, #tpu.memory_space<vmem>>, vector<1x512xf32>
    %28 = vector.broadcast %27 : vector<1x512xf32> to vector<8x512xf32>
    %29 = arith.mulf %26, %28 : vector<8x512xf32>
    %c24 = arith.constant 24 : index
    %c0_14 = arith.constant 0 : index
    %30 = vector.load %arg8[%c24, %c0_14] : memref<72x512xf32, #tpu.memory_space<vmem>>, vector<8x512xf32>
    tpu.vector_store %arg8[%c24, %c0_14], %29 {strides = array<i32>} : memref<72x512xf32, #tpu.memory_space<vmem>>, vector<8x512xf32>,
    %c32 = arith.constant 32 : index
    %c0_15 = arith.constant 0 : index
    %31 = vector.load %arg8[%c32, %c0_15] : memref<72x512xf32, #tpu.memory_space<vmem>>, vector<8x512xf32>
    tpu.vector_store %arg8[%c32, %c0_15], %0 {strides = array<i32>} : memref<72x512xf32, #tpu.memory_space<vmem>>, vector<8x512xf32>,
    %32 = vector.extract_strided_slice %0 {offsets = [0, 1], sizes = [8, 511], strides = [1, 1]} : vector<8x512xf32> to vector<8x511xf32>
    %33 = vector.extract_strided_slice %0 {offsets = [0, 0], sizes = [8, 1], strides = [1, 1]} : vector<8x512xf32> to vector<8x1xf32>
    %34 = tpu.concatenate %32, %33 in 1 : vector<8x511xf32>, vector<8x1xf32> -> vector<8x512xf32>
    %c5 = arith.constant 5 : index
    %c0_16 = arith.constant 0 : index
    %35 = vector.load %arg2[%c5, %c0_16] : memref<9x512xf32, #tpu.memory_space<vmem>>, vector<1x512xf32>
    %36 = vector.broadcast %35 : vector<1x512xf32> to vector<8x512xf32>
    %37 = arith.mulf %34, %36 : vector<8x512xf32>
    %c40 = arith.constant 40 : index
    %c0_17 = arith.constant 0 : index
    %38 = vector.load %arg8[%c40, %c0_17] : memref<72x512xf32, #tpu.memory_space<vmem>>, vector<8x512xf32>
    tpu.vector_store %arg8[%c40, %c0_17], %37 {strides = array<i32>} : memref<72x512xf32, #tpu.memory_space<vmem>>, vector<8x512xf32>,
    %39 = vector.extract_strided_slice %0 {offsets = [0, 15], sizes = [8, 497], strides = [1, 1]} : vector<8x512xf32> to vector<8x497xf32>
    %40 = vector.extract_strided_slice %0 {offsets = [0, 0], sizes = [8, 15], strides = [1, 1]} : vector<8x512xf32> to vector<8x15xf32>
    %41 = tpu.concatenate %39, %40 in 1 : vector<8x497xf32>, vector<8x15xf32> -> vector<8x512xf32>
    %c6 = arith.constant 6 : index
    %c0_18 = arith.constant 0 : index
    %42 = vector.load %arg2[%c6, %c0_18] : memref<9x512xf32, #tpu.memory_space<vmem>>, vector<1x512xf32>
    %43 = vector.broadcast %42 : vector<1x512xf32> to vector<8x512xf32>
    %44 = arith.mulf %41, %43 : vector<8x512xf32>
    %c48 = arith.constant 48 : index
    %c0_19 = arith.constant 0 : index
    %45 = vector.load %arg8[%c48, %c0_19] : memref<72x512xf32, #tpu.memory_space<vmem>>, vector<8x512xf32>
    tpu.vector_store %arg8[%c48, %c0_19], %44 {strides = array<i32>} : memref<72x512xf32, #tpu.memory_space<vmem>>, vector<8x512xf32>,
    %46 = vector.extract_strided_slice %0 {offsets = [0, 16], sizes = [8, 496], strides = [1, 1]} : vector<8x512xf32> to vector<8x496xf32>
    %47 = vector.extract_strided_slice %0 {offsets = [0, 0], sizes = [8, 16], strides = [1, 1]} : vector<8x512xf32> to vector<8x16xf32>
    %48 = tpu.concatenate %46, %47 in 1 : vector<8x496xf32>, vector<8x16xf32> -> vector<8x512xf32>
    %c7 = arith.constant 7 : index
    %c0_20 = arith.constant 0 : index
    %49 = vector.load %arg2[%c7, %c0_20] : memref<9x512xf32, #tpu.memory_space<vmem>>, vector<1x512xf32>
    %50 = vector.broadcast %49 : vector<1x512xf32> to vector<8x512xf32>
    %51 = arith.mulf %48, %50 : vector<8x512xf32>
    %c56 = arith.constant 56 : index
    %c0_21 = arith.constant 0 : index
    %52 = vector.load %arg8[%c56, %c0_21] : memref<72x512xf32, #tpu.memory_space<vmem>>, vector<8x512xf32>
    tpu.vector_store %arg8[%c56, %c0_21], %51 {strides = array<i32>} : memref<72x512xf32, #tpu.memory_space<vmem>>, vector<8x512xf32>,
    %53 = vector.extract_strided_slice %0 {offsets = [0, 17], sizes = [8, 495], strides = [1, 1]} : vector<8x512xf32> to vector<8x495xf32>
    %54 = vector.extract_strided_slice %0 {offsets = [0, 0], sizes = [8, 17], strides = [1, 1]} : vector<8x512xf32> to vector<8x17xf32>
    %55 = tpu.concatenate %53, %54 in 1 : vector<8x495xf32>, vector<8x17xf32> -> vector<8x512xf32>
    %c8_22 = arith.constant 8 : index
    %c0_23 = arith.constant 0 : index
    %56 = vector.load %arg2[%c8_22, %c0_23] : memref<9x512xf32, #tpu.memory_space<vmem>>, vector<1x512xf32>
    %57 = vector.broadcast %56 : vector<1x512xf32> to vector<8x512xf32>
    %58 = arith.mulf %55, %57 : vector<8x512xf32>
    %c64 = arith.constant 64 : index
    %c0_24 = arith.constant 0 : index
    %59 = vector.load %arg8[%c64, %c0_24] : memref<72x512xf32, #tpu.memory_space<vmem>>, vector<8x512xf32>
    tpu.vector_store %arg8[%c64, %c0_24], %58 {strides = array<i32>} : memref<72x512xf32, #tpu.memory_space<vmem>>, vector<8x512xf32>,
    %c0_25 = arith.constant 0 : index
    %c0_26 = arith.constant 0 : index
    %60 = vector.load %arg8[%c0_25, %c0_26] : memref<72x512xf32, #tpu.memory_space<vmem>>, vector<72x512xf32>
    %cst = arith.constant dense<0.000000e+00> : vector<8x512xf32>
    %61 = tpu.matmul %1, %60, %cst {dimension_numbers = #tpu.dot_dimension_numbers<[1], [0], [0], [1], [0, 0, 1, 1], [], []>} : vector<8x72xf32>, vector<72x512xf32>, vector<8x512xf32> -> vector<8x512xf32>
    %62 = vector.broadcast %2 : vector<8x1xf32> to vector<8x512xf32>
    %63 = arith.addf %61, %62 : vector<8x512xf32>
    %cst_27 = arith.constant 0.000000e+00 : f32
    %64 = vector.broadcast %cst_27 : f32 to vector<8x512xf32>
    %65 = arith.maximumf %63, %64 : vector<8x512xf32>
    %c0_28 = arith.constant 0 : index
    %c0_29 = arith.constant 0 : index
    %66 = vector.load %arg5[%c0_28, %c0_29] : memref<8x72xf32, #tpu.memory_space<vmem>>, vector<8x72xf32>
    %c0_30 = arith.constant 0 : index
    %c0_31 = arith.constant 0 : index
    %67 = vector.load %arg6[%c0_30, %c0_31] : memref<8x1xf32, #tpu.memory_space<vmem>>, vector<8x1xf32>
    %68 = vector.extract_strided_slice %65 {offsets = [0, 495], sizes = [8, 17], strides = [1, 1]} : vector<8x512xf32> to vector<8x17xf32>
    %69 = vector.extract_strided_slice %65 {offsets = [0, 0], sizes = [8, 495], strides = [1, 1]} : vector<8x512xf32> to vector<8x495xf32>
    %70 = tpu.concatenate %68, %69 in 1 : vector<8x17xf32>, vector<8x495xf32> -> vector<8x512xf32>
    %c0_32 = arith.constant 0 : index
    %c0_33 = arith.constant 0 : index
    %71 = vector.load %arg2[%c0_32, %c0_33] : memref<9x512xf32, #tpu.memory_space<vmem>>, vector<1x512xf32>
    %72 = vector.broadcast %71 : vector<1x512xf32> to vector<8x512xf32>
    %73 = arith.mulf %70, %72 : vector<8x512xf32>
    %c0_34 = arith.constant 0 : index
    %c0_35 = arith.constant 0 : index
    %74 = vector.load %arg8[%c0_34, %c0_35] : memref<72x512xf32, #tpu.memory_space<vmem>>, vector<8x512xf32>
    tpu.vector_store %arg8[%c0_34, %c0_35], %73 {strides = array<i32>} : memref<72x512xf32, #tpu.memory_space<vmem>>, vector<8x512xf32>,
    %75 = vector.extract_strided_slice %65 {offsets = [0, 496], sizes = [8, 16], strides = [1, 1]} : vector<8x512xf32> to vector<8x16xf32>
    %76 = vector.extract_strided_slice %65 {offsets = [0, 0], sizes = [8, 496], strides = [1, 1]} : vector<8x512xf32> to vector<8x496xf32>
    %77 = tpu.concatenate %75, %76 in 1 : vector<8x16xf32>, vector<8x496xf32> -> vector<8x512xf32>
    %c1_36 = arith.constant 1 : index
    %c0_37 = arith.constant 0 : index
    %78 = vector.load %arg2[%c1_36, %c0_37] : memref<9x512xf32, #tpu.memory_space<vmem>>, vector<1x512xf32>
    %79 = vector.broadcast %78 : vector<1x512xf32> to vector<8x512xf32>
    %80 = arith.mulf %77, %79 : vector<8x512xf32>
    %c8_38 = arith.constant 8 : index
    %c0_39 = arith.constant 0 : index
    %81 = vector.load %arg8[%c8_38, %c0_39] : memref<72x512xf32, #tpu.memory_space<vmem>>, vector<8x512xf32>
    tpu.vector_store %arg8[%c8_38, %c0_39], %80 {strides = array<i32>} : memref<72x512xf32, #tpu.memory_space<vmem>>, vector<8x512xf32>,
    %82 = vector.extract_strided_slice %65 {offsets = [0, 497], sizes = [8, 15], strides = [1, 1]} : vector<8x512xf32> to vector<8x15xf32>
    %83 = vector.extract_strided_slice %65 {offsets = [0, 0], sizes = [8, 497], strides = [1, 1]} : vector<8x512xf32> to vector<8x497xf32>
    %84 = tpu.concatenate %82, %83 in 1 : vector<8x15xf32>, vector<8x497xf32> -> vector<8x512xf32>
    %c2_40 = arith.constant 2 : index
    %c0_41 = arith.constant 0 : index
    %85 = vector.load %arg2[%c2_40, %c0_41] : memref<9x512xf32, #tpu.memory_space<vmem>>, vector<1x512xf32>
    %86 = vector.broadcast %85 : vector<1x512xf32> to vector<8x512xf32>
    %87 = arith.mulf %84, %86 : vector<8x512xf32>
    %c16_42 = arith.constant 16 : index
    %c0_43 = arith.constant 0 : index
    %88 = vector.load %arg8[%c16_42, %c0_43] : memref<72x512xf32, #tpu.memory_space<vmem>>, vector<8x512xf32>
    tpu.vector_store %arg8[%c16_42, %c0_43], %87 {strides = array<i32>} : memref<72x512xf32, #tpu.memory_space<vmem>>, vector<8x512xf32>,
    %89 = vector.extract_strided_slice %65 {offsets = [0, 511], sizes = [8, 1], strides = [1, 1]} : vector<8x512xf32> to vector<8x1xf32>
    %90 = vector.extract_strided_slice %65 {offsets = [0, 0], sizes = [8, 511], strides = [1, 1]} : vector<8x512xf32> to vector<8x511xf32>
    %91 = tpu.concatenate %89, %90 in 1 : vector<8x1xf32>, vector<8x511xf32> -> vector<8x512xf32>
    %c3_44 = arith.constant 3 : index
    %c0_45 = arith.constant 0 : index
    %92 = vector.load %arg2[%c3_44, %c0_45] : memref<9x512xf32, #tpu.memory_space<vmem>>, vector<1x512xf32>
    %93 = vector.broadcast %92 : vector<1x512xf32> to vector<8x512xf32>
    %94 = arith.mulf %91, %93 : vector<8x512xf32>
    %c24_46 = arith.constant 24 : index
    %c0_47 = arith.constant 0 : index
    %95 = vector.load %arg8[%c24_46, %c0_47] : memref<72x512xf32, #tpu.memory_space<vmem>>, vector<8x512xf32>
    tpu.vector_store %arg8[%c24_46, %c0_47], %94 {strides = array<i32>} : memref<72x512xf32, #tpu.memory_space<vmem>>, vector<8x512xf32>,
    %c32_48 = arith.constant 32 : index
    %c0_49 = arith.constant 0 : index
    %96 = vector.load %arg8[%c32_48, %c0_49] : memref<72x512xf32, #tpu.memory_space<vmem>>, vector<8x512xf32>
    tpu.vector_store %arg8[%c32_48, %c0_49], %65 {strides = array<i32>} : memref<72x512xf32, #tpu.memory_space<vmem>>, vector<8x512xf32>,
    %97 = vector.extract_strided_slice %65 {offsets = [0, 1], sizes = [8, 511], strides = [1, 1]} : vector<8x512xf32> to vector<8x511xf32>
    %98 = vector.extract_strided_slice %65 {offsets = [0, 0], sizes = [8, 1], strides = [1, 1]} : vector<8x512xf32> to vector<8x1xf32>
    %99 = tpu.concatenate %97, %98 in 1 : vector<8x511xf32>, vector<8x1xf32> -> vector<8x512xf32>
    %c5_50 = arith.constant 5 : index
    %c0_51 = arith.constant 0 : index
    %100 = vector.load %arg2[%c5_50, %c0_51] : memref<9x512xf32, #tpu.memory_space<vmem>>, vector<1x512xf32>
    %101 = vector.broadcast %100 : vector<1x512xf32> to vector<8x512xf32>
    %102 = arith.mulf %99, %101 : vector<8x512xf32>
    %c40_52 = arith.constant 40 : index
    %c0_53 = arith.constant 0 : index
    %103 = vector.load %arg8[%c40_52, %c0_53] : memref<72x512xf32, #tpu.memory_space<vmem>>, vector<8x512xf32>
    tpu.vector_store %arg8[%c40_52, %c0_53], %102 {strides = array<i32>} : memref<72x512xf32, #tpu.memory_space<vmem>>, vector<8x512xf32>,
    %104 = vector.extract_strided_slice %65 {offsets = [0, 15], sizes = [8, 497], strides = [1, 1]} : vector<8x512xf32> to vector<8x497xf32>
    %105 = vector.extract_strided_slice %65 {offsets = [0, 0], sizes = [8, 15], strides = [1, 1]} : vector<8x512xf32> to vector<8x15xf32>
    %106 = tpu.concatenate %104, %105 in 1 : vector<8x497xf32>, vector<8x15xf32> -> vector<8x512xf32>
    %c6_54 = arith.constant 6 : index
    %c0_55 = arith.constant 0 : index
    %107 = vector.load %arg2[%c6_54, %c0_55] : memref<9x512xf32, #tpu.memory_space<vmem>>, vector<1x512xf32>
    %108 = vector.broadcast %107 : vector<1x512xf32> to vector<8x512xf32>
    %109 = arith.mulf %106, %108 : vector<8x512xf32>
    %c48_56 = arith.constant 48 : index
    %c0_57 = arith.constant 0 : index
    %110 = vector.load %arg8[%c48_56, %c0_57] : memref<72x512xf32, #tpu.memory_space<vmem>>, vector<8x512xf32>
    tpu.vector_store %arg8[%c48_56, %c0_57], %109 {strides = array<i32>} : memref<72x512xf32, #tpu.memory_space<vmem>>, vector<8x512xf32>,
    %111 = vector.extract_strided_slice %65 {offsets = [0, 16], sizes = [8, 496], strides = [1, 1]} : vector<8x512xf32> to vector<8x496xf32>
    %112 = vector.extract_strided_slice %65 {offsets = [0, 0], sizes = [8, 16], strides = [1, 1]} : vector<8x512xf32> to vector<8x16xf32>
    %113 = tpu.concatenate %111, %112 in 1 : vector<8x496xf32>, vector<8x16xf32> -> vector<8x512xf32>
    %c7_58 = arith.constant 7 : index
    %c0_59 = arith.constant 0 : index
    %114 = vector.load %arg2[%c7_58, %c0_59] : memref<9x512xf32, #tpu.memory_space<vmem>>, vector<1x512xf32>
    %115 = vector.broadcast %114 : vector<1x512xf32> to vector<8x512xf32>
    %116 = arith.mulf %113, %115 : vector<8x512xf32>
    %c56_60 = arith.constant 56 : index
    %c0_61 = arith.constant 0 : index
    %117 = vector.load %arg8[%c56_60, %c0_61] : memref<72x512xf32, #tpu.memory_space<vmem>>, vector<8x512xf32>
    tpu.vector_store %arg8[%c56_60, %c0_61], %116 {strides = array<i32>} : memref<72x512xf32, #tpu.memory_space<vmem>>, vector<8x512xf32>,
    %118 = vector.extract_strided_slice %65 {offsets = [0, 17], sizes = [8, 495], strides = [1, 1]} : vector<8x512xf32> to vector<8x495xf32>
    %119 = vector.extract_strided_slice %65 {offsets = [0, 0], sizes = [8, 17], strides = [1, 1]} : vector<8x512xf32> to vector<8x17xf32>
    %120 = tpu.concatenate %118, %119 in 1 : vector<8x495xf32>, vector<8x17xf32> -> vector<8x512xf32>
    %c8_62 = arith.constant 8 : index
    %c0_63 = arith.constant 0 : index
    %121 = vector.load %arg2[%c8_62, %c0_63] : memref<9x512xf32, #tpu.memory_space<vmem>>, vector<1x512xf32>
    %122 = vector.broadcast %121 : vector<1x512xf32> to vector<8x512xf32>
    %123 = arith.mulf %120, %122 : vector<8x512xf32>
    %c64_64 = arith.constant 64 : index
    %c0_65 = arith.constant 0 : index
    %124 = vector.load %arg8[%c64_64, %c0_65] : memref<72x512xf32, #tpu.memory_space<vmem>>, vector<8x512xf32>
    tpu.vector_store %arg8[%c64_64, %c0_65], %123 {strides = array<i32>} : memref<72x512xf32, #tpu.memory_space<vmem>>, vector<8x512xf32>,
    %c0_66 = arith.constant 0 : index
    %c0_67 = arith.constant 0 : index
    %125 = vector.load %arg8[%c0_66, %c0_67] : memref<72x512xf32, #tpu.memory_space<vmem>>, vector<72x512xf32>
    %cst_68 = arith.constant dense<0.000000e+00> : vector<8x512xf32>
    %126 = tpu.matmul %66, %125, %cst_68 {dimension_numbers = #tpu.dot_dimension_numbers<[1], [0], [0], [1], [0, 0, 1, 1], [], []>} : vector<8x72xf32>, vector<72x512xf32>, vector<8x512xf32> -> vector<8x512xf32>
    %127 = vector.broadcast %67 : vector<8x1xf32> to vector<8x512xf32>
    %128 = arith.addf %126, %127 : vector<8x512xf32>
    %129 = arith.addf %128, %0 : vector<8x512xf32>
    %c0_69 = arith.constant 0 : index
    %c0_70 = arith.constant 0 : index
    %130 = vector.load %arg7[%c0_69, %c0_70] : memref<8x512xf32, #tpu.memory_space<vmem>>, vector<8x512xf32>
    tpu.vector_store %arg7[%c0_69, %c0_70], %129 {strides = array<i32>} : memref<8x512xf32, #tpu.memory_space<vmem>>, vector<8x512xf32>,
    return
  }
  func.func @transform_0(%arg0: i32) -> (i32, i32) {
    %c0_i32 = arith.constant 0 : i32
    %c0_i32_0 = arith.constant 0 : i32
    %c0_i32_1 = arith.constant 0 : i32
    return %c0_i32, %c0_i32_0 : i32, i32
  }
  func.func @transform_1(%arg0: i32) -> (i32, i32) {
    %c0_i32 = arith.constant 0 : i32
    %c0_i32_0 = arith.constant 0 : i32
    %c0_i32_1 = arith.constant 0 : i32
    return %c0_i32, %c0_i32_0 : i32, i32
  }
  func.func @transform_2(%arg0: i32) -> (i32, i32) {
    %c0_i32 = arith.constant 0 : i32
    %c0_i32_0 = arith.constant 0 : i32
    %c0_i32_1 = arith.constant 0 : i32
    return %c0_i32, %c0_i32_0 : i32, i32
  }
  func.func @transform_3(%arg0: i32) -> (i32, i32) {
    %c0_i32 = arith.constant 0 : i32
    %c0_i32_0 = arith.constant 0 : i32
    %c0_i32_1 = arith.constant 0 : i32
    return %c0_i32, %c0_i32_0 : i32, i32
  }
  func.func @transform_4(%arg0: i32) -> (i32, i32) {
    %c0_i32 = arith.constant 0 : i32
    %c0_i32_0 = arith.constant 0 : i32
    %c0_i32_1 = arith.constant 0 : i32
    return %c0_i32, %c0_i32_0 : i32, i32
  }
  func.func @transform_5(%arg0: i32) -> (i32, i32) {
    %c0_i32 = arith.constant 0 : i32
    %c0_i32_0 = arith.constant 0 : i32
    %c0_i32_1 = arith.constant 0 : i32
    return %c0_i32, %c0_i32_0 : i32, i32
  }
  func.func @transform_6(%arg0: i32) -> (i32, i32) {
    %c0_i32 = arith.constant 0 : i32
    %c0_i32_0 = arith.constant 0 : i32
    %c0_i32_1 = arith.constant 0 : i32
    return %c0_i32, %c0_i32_0 : i32, i32
  }
}

</mosaic_0001>

<bundles_post_ra>
// kernel: tpu_custom_call.1
= control target key start
LH: loop header
LB: loop body
LE: loop exit
PB: predicated region body
PF: predicated region fallthrough
CT: control target
= control target key end

     0   :  { %11 = vsyncpa [#allocation4], 0  ;;  %s1843_s0 = inlined_call_operand.hbm [shape: f32[8,512], index: 0, kind: input, shape index: {}]   ;;  %s1844_s1 = inlined_call_operand.hbm [shape: f32[9,512], index: 1, kind: input, shape index: {}]   ;;  %s1845_s2 = inlined_call_operand.vmem [shape: f32[8,72], index: 2, kind: input, shape index: {}]   ;;  %s1846_s3 = inlined_call_operand.vmem [shape: f32[8,1], index: 3, kind: input, shape index: {}]   ;;  %s1847_s4 = inlined_call_operand.vmem [shape: f32[8,72], index: 4, kind: input, shape index: {}]   ;;  %s1848_s5 = inlined_call_operand.vmem [shape: f32[8,1], index: 5, kind: input, shape index: {}]   ;;  %s1849_s6 = inlined_call_operand.hbm [shape: f32[8,512], index: 6, kind: output, shape index: {}]  }
   0x1   :  { %12 = vsyncpa [#allocation7], 0 }
   0x2   :  { %13 = vsyncpa [#allocation5], 0  ;;  %s1398_s21 = smov [#allocation3]   ;;  %s1399_s23 = smov [#allocation6]  }
   0x3   :  { %s20_s22 = sshll.u32 %s1398_s21, 4  ;;  %s29_s24 = sshll.u32 %s1399_s23, 4  ;;  %s21_s22 = int_to_ptr.vmem [resolvable:$true] %s20_s22  ;;  %s1448_s24 = int_to_ptr.vmem [resolvable:$true] %s29_s24 }
   0x4   :  { %s1326_s27 = scalar_lea.hbm %s1843_s0, 512 }
   0x5   :  { %p1327_p0 = scmp.ne.s32.totalorder %s1843_s0, %s1326_s27  ;;  %p1330_p1 = scmp.lt.u32.totalorder %s1326_s27, %s1843_s0 }
   0x7   :  { %p1332_p2 = pnand %p1330_p1, %p1327_p0 }
   0x9   :  { %1335 = shalt.err (!%p1332_p2)
}
   0xa   :  { %s1336_s8 = scalar_lea.vmem %s21_s22, 512  ;;  %p1341_p4 = scmp.lt.s32.totalorder %s21_s22, %s21_s22 }
   0xb   :  { %p1337_p3 = scmp.ne.s32.totalorder %s21_s22, %s1336_s8  ;;  %p1342_p5 = scmp.lt.s32.totalorder %s1336_s8, %s1336_s8 }
   0xd   :  { %p1343_p6 = por %p1342_p5, %p1341_p4 }
   0xf   :  { %p1344_p7 = pnand %p1343_p6, %p1337_p3 }
  0x11   :  { %1347 = shalt.err (!%p1344_p7)
}
  0x12   :  { %23 = dma.hbm_to_vmem [thread:$0]  %s1843_s0, 512, %s21_s22, [#allocation4]  }
  0x13   :  { %s1348_s13 = scalar_lea.hbm %s1844_s1, 1024 }
  0x14   :  { %p1349_p8 = scmp.ne.s32.totalorder %s1844_s1, %s1348_s13  ;;  %p1352_p9 = scmp.lt.u32.totalorder %s1348_s13, %s1844_s1 }
  0x16   :  { %p1354_p10 = pnand %p1352_p9, %p1349_p8 }
  0x18   :  { %1357 = shalt.err (!%p1354_p10)
}
  0x19   :  { %s1358_s18 = scalar_lea.vmem %s1448_s24, 1024  ;;  %p1363_p12 = scmp.lt.s32.totalorder %s1448_s24, %s1448_s24 }
  0x1a   :  { %p1359_p11 = scmp.ne.s32.totalorder %s1448_s24, %s1358_s18  ;;  %p1364_p13 = scmp.lt.s32.totalorder %s1358_s18, %s1358_s18 }
  0x1c   :  { %p1365_p0 = por %p1364_p13, %p1363_p12 }
  0x1e   :  { %p1366_p1 = pnand %p1365_p0, %p1359_p11 }
  0x20   :  { %1369 = shalt.err (!%p1366_p1)
}
  0x21   :  { %s1400_s0 = smov 512   ;;  %s1401_s19 = smov 32  }
  0x22   :  { %35 = dma.hbm_to_vmem [thread:$0]  %s1844_s1, 1024, %s1448_s24, [#allocation7], %s1400_s0, %s1400_s0, %s1401_s19  }
  0x23   :  { %1392 = dma.done.wait [#allocation4], 512  }
  0x24   :  { %1393 = vsyncadd [#allocation4], 4294966784 }
  0x25   :  { %1394 = dma.done.wait [#allocation7], 1024  }
  0x26   :  { %1395 = vsyncadd [#allocation7], 4294966272  ;;  %v1479_v0 = vld [vmem:[#allocation3 + $0x18] sm:$0xff]  ;;  %v1481_v1 = vld [vmem:[#allocation3 + $0x8] sm:$0xff]  ;;  %s1402_s22 = smov 17   ;;  %s1403_s1 = smov 16   ;;  %v80_v7 = vlaneseq }
  0x27   :  { %57 = vrot.lane.b32.xlu0 %v1479_v0, %s1402_s22  ;;  %65 = vrot.lane.b32.xlu1 %v1481_v1, %s1402_s22  ;;  %v1487_v2 = vld [vmem:[#allocation3 + $0x10] sm:$0xff]  ;;  %v1489_v3 = vld [vmem:[#allocation3] sm:$0xff]  ;;  %s1404_s23 = smov 15   ;;  %s1405_s24 = smov 1   ;;  %v1409_v4 = vmov 0.0   ;;  %v1410_v5 = vmov 0  }
  0x28   :  { %s1406_s25 = smov 127   ;;  %s1407_s26 = smov 113   ;;  %564 = vmatprep.mubr.f32.mxu0 %v1409_v4  ;;  %635 = vmatprep.mubr.f32.mxu1 %v1409_v4  ;;  %v55_v6 = vld [vmem:[%s1846_s3] sm:$0xff]  ;;  %v81_v10 = vshrl.u32 %v80_v7, 7  ;;  %vm69_vm0 = vcmask 138240   ;;  %vm117_vm1 = vcmask 130048  }
  0x29   :  { %s1408_s27 = smov 112   ;;  %1325 = vset.pattern.permute.xlu0 %v1410_v5  ;;  %s1411_s28 = smov 111   ;;  %v78_v15 = vld [vmem:[#allocation6] ss:$8 sm:$0xf]  ;;  %vm215_vm2 = vcmask 7168  }
  0x2a   :  { %v1556_v11 = vsub.s32 2, %v81_v10  ;;  %v1558_v14 = vsub.s32 1, %v81_v10  ;;  %v1560_v16 = vsub.s32 3, %v81_v10  ;;  %v127_v17 = vld [vmem:[#allocation6 + $0x1] ss:$8 sm:$0xf] }
  0x2b   :  { %67 = vrot.lane.b32.xlu1 %v1487_v2, %s1402_s22  ;;  %63 = vrot.lane.b32.xlu0 %v1489_v3, %s1402_s22  ;;  %v1562_v18 = vsub.s32 0, %v81_v10  ;;  %v225_v55 = vld [vmem:[#allocation6 + $0x3] ss:$8 sm:$0xf]  ;;  %vm166_vm3 = vcmask 121856   ;;  %vm267_vm4 = vcmask 1039360  }
  0x2c   :  { %v91_v19 = vrot.slane %v78_v15, %v1556_v11  ;;  %v87_v22 = vrot.slane %v78_v15, %v1558_v14  ;;  %v95_v26 = vrot.slane %v78_v15, %v1560_v16  ;;  %v140_v28 = vrot.slane %v127_v17, %v1556_v11  ;;  %v176_v56 = vld [vmem:[#allocation6 + $0x2] ss:$8 sm:$0xf] }
  0x2d   :  { %v132_v25 = vrot.slane %v127_v17, %v1562_v18  ;;  %v136_v29 = vrot.slane %v127_v17, %v1558_v14  ;;  %v144_v30 = vrot.slane %v127_v17, %v1560_v16  ;;  %v83_v32 = vrot.slane %v78_v15, %v1562_v18 }
  0x2e   :  { %v193_v57 = vrot.slane %v176_v56, %v1560_v16  ;;  %v185_v58 = vrot.slane %v176_v56, %v1558_v14  ;;  %v189_v62 = vrot.slane %v176_v56, %v1556_v11  ;;  %v230_v5 = vrot.slane %v225_v55, %v1562_v18 }
  0x2f   :  { %111 = vrot.lane.b32.xlu1 %v1489_v3, %s1403_s1  ;;  %108 = vrot.lane.b32.xlu0 %v1479_v0, %s1403_s1  ;;  %v242_v7 = vrot.slane %v225_v55, %v1560_v16  ;;  %v181_v10 = vrot.slane %v176_v56, %v1562_v18  ;;  %vm365_vm5 = vcmask 916480   ;;  %vm316_vm6 = vcmask 924672  }
  0x30   :  { %vm414_vm7 = vcmask 908288   ;;  %vm496_vm8 = vcmask 588800  }
  0x33   :  { %115 = vrot.lane.b32.xlu1 %v1487_v2, %s1403_s1  ;;  %113 = vrot.lane.b32.xlu0 %v1481_v1, %s1403_s1 }
  0x37   :  { %160 = vrot.lane.b32.xlu1 %v1489_v3, %s1404_s23  ;;  %157 = vrot.lane.b32.xlu0 %v1479_v0, %s1404_s23 }
  0x3b   :  { %164 = vrot.lane.b32.xlu1 %v1487_v2, %s1404_s23  ;;  %162 = vrot.lane.b32.xlu0 %v1481_v1, %s1404_s23 }
  0x3f   :  { %209 = vrot.lane.b32.xlu1 %v1489_v3, %s1405_s24  ;;  %206 = vrot.lane.b32.xlu0 %v1479_v0, %s1405_s24 }
  0x43   :  { %213 = vrot.lane.b32.xlu1 %v1487_v2, %s1405_s24  ;;  %211 = vrot.lane.b32.xlu0 %v1481_v1, %s1405_s24 }
  0x47   :  { %261 = vrot.lane.b32.xlu1 %v1481_v1, %s1406_s25  ;;  %259 = vrot.lane.b32.xlu0 %v1489_v3, %s1406_s25 }
  0x4b   :  { %265 = vrot.lane.b32.xlu1 %v1479_v0, %s1406_s25  ;;  %263 = vrot.lane.b32.xlu0 %v1487_v2, %s1406_s25 }
  0x4f   :  { %310 = vrot.lane.b32.xlu1 %v1481_v1, %s1407_s26  ;;  %308 = vrot.lane.b32.xlu0 %v1489_v3, %s1407_s26 }
  0x53   :  { %314 = vrot.lane.b32.xlu1 %v1479_v0, %s1407_s26  ;;  %312 = vrot.lane.b32.xlu0 %v1487_v2, %s1407_s26 }
  0x57   :  { %359 = vrot.lane.b32.xlu1 %v1481_v1, %s1408_s27  ;;  %357 = vrot.lane.b32.xlu0 %v1489_v3, %s1408_s27 }
  0x5b   :  { %363 = vrot.lane.b32.xlu1 %v1479_v0, %s1408_s27  ;;  %361 = vrot.lane.b32.xlu0 %v1487_v2, %s1408_s27 }
  0x5f   :  { %408 = vrot.lane.b32.xlu1 %v1481_v1, %s1411_s28  ;;  %406 = vrot.lane.b32.xlu0 %v1489_v3, %s1411_s28 }
  0x63   :  { %412 = vrot.lane.b32.xlu1 %v1479_v0, %s1411_s28  ;;  %410 = vrot.lane.b32.xlu0 %v1487_v2, %s1411_s28 }
  0x67   :  { %493 = vperm.xlu0 %1325, %v55_v6  }
  0x99   :  { %v58_v8 = vpop.permute.xlu0 %57  ;;  %v66_v9 = vpop.permute.xlu1 %65 }
  0x9d   :  { %v68_v12 = vpop.permute.xlu1 %67  ;;  %v64_v13 = vpop.permute.xlu0 %63 }
  0x9e   :  { %v71_v23 = vsel %vm69_vm0, %v66_v9, %v68_v12  ;;  %v70_v24 = vsel %vm69_vm0, %v64_v13, %v66_v9  ;;  %v72_v31 = vsel %vm69_vm0, %v68_v12, %v58_v8  ;;  %v77_v34 = vsel %vm69_vm0, %v58_v8, %v64_v13 }
  0x9f   :  { %v102_v33 = vmul.f32 %v91_v19, %v71_v23  ;;  %v101_v37 = vmul.f32 %v87_v22, %v70_v24  ;;  %v103_v44 = vmul.f32 %v95_v26, %v72_v31  ;;  %v100_v46 = vmul.f32 %v83_v32, %v77_v34 }
  0xa0   :  { %v234_v8 = vrot.slane %v225_v55, %v1558_v14  ;;  %v238_v9 = vrot.slane %v225_v55, %v1556_v11 }
  0xa1   :  { %v112_v20 = vpop.permute.xlu1 %111  ;;  %v109_v21 = vpop.permute.xlu0 %108 }
  0xa2   :  { %v125_v27 = vsel %vm117_vm1, %v109_v21, %v112_v20 }
  0xa3   :  { %v149_v38 = vmul.f32 %v132_v25, %v125_v27 }
  0xa5   :  { %v116_v35 = vpop.permute.xlu1 %115  ;;  %v114_v36 = vpop.permute.xlu0 %113  ;;  %v1248_v52 = vpack.c.bf16 %v149_v38, %v100_v46 }
  0xa6   :  { %v120_v39 = vsel %vm117_vm1, %v116_v35, %v109_v21  ;;  %v118_v40 = vsel %vm117_vm1, %v112_v20, %v114_v36  ;;  %v119_v41 = vsel %vm117_vm1, %v114_v36, %v116_v35 }
  0xa7   :  { %v151_v42 = vmul.f32 %v140_v28, %v119_v41  ;;  %v150_v43 = vmul.f32 %v136_v29, %v118_v40  ;;  %v152_v45 = vmul.f32 %v144_v30, %v120_v39  ;;  %v278_v29 = vld [vmem:[#allocation6 + $0x5] ss:$8 sm:$0xf] }
  0xa8   :  { %v283_v36 = vrot.slane %v278_v29, %v1562_v18  ;;  %v295_v38 = vrot.slane %v278_v29, %v1560_v16  ;;  %v287_v40 = vrot.slane %v278_v29, %v1558_v14  ;;  %v291_v41 = vrot.slane %v278_v29, %v1556_v11 }
  0xa9   :  { %v161_v47 = vpop.permute.xlu1 %160  ;;  %v158_v48 = vpop.permute.xlu0 %157  ;;  %v1246_v49 = vpack.c.bf16 %v150_v43, %v101_v37  ;;  %v1262_v50 = vpack.c.bf16 %v152_v45, %v103_v44  ;;  %v1264_v51 = vpack.c.bf16 %v151_v42, %v102_v33 }
  0xaa   :  { %v174_v13 = vsel %vm166_vm3, %v158_v48, %v161_v47 }
  0xab   :  { %1247 = vmatprep.subr.bf16.mxu0 %v1246_v49  ;;  %1263 = vmatprep.subr.bf16.mxu1 %v1262_v50  ;;  %v198_v30 = vmul.f32 %v181_v10, %v174_v13 }
  0xac   :  { %1249 = vmatpush1.bf16.msra.mxu0 %v1248_v52  ;;  %1265 = vmatpush1.bf16.msra.mxu1 %v1264_v51 }
  0xad   :  { %v165_v53 = vpop.permute.xlu1 %164  ;;  %v163_v54 = vpop.permute.xlu0 %162 }
  0xae   :  { %v169_v61 = vsel %vm166_vm3, %v165_v53, %v158_v48  ;;  %v167_v63 = vsel %vm166_vm3, %v161_v47, %v163_v54  ;;  %v168_v12 = vsel %vm166_vm3, %v163_v54, %v165_v53 }
  0xaf   :  { %v201_v15 = vmul.f32 %v193_v57, %v169_v61  ;;  %v199_v17 = vmul.f32 %v185_v58, %v167_v63  ;;  %v200_v25 = vmul.f32 %v189_v62, %v168_v12 }
  0xb1   :  { %v210_v59 = vpop.permute.xlu1 %209  ;;  %v207_v60 = vpop.permute.xlu0 %206 }
  0xb2   :  { %v223_v6 = vsel %vm215_vm2, %v207_v60, %v210_v59 }
  0xb3   :  { %v247_v21 = vmul.f32 %v230_v5, %v223_v6 }
  0xb5   :  { %v214_v19 = vpop.permute.xlu1 %213  ;;  %v212_v20 = vpop.permute.xlu0 %211  ;;  %v1252_v37 = vpack.c.bf16 %v247_v21, %v198_v30 }
  0xb6   :  { %v218_v22 = vsel %vm215_vm2, %v214_v19, %v207_v60  ;;  %v216_v23 = vsel %vm215_vm2, %v210_v59, %v212_v20  ;;  %v217_v24 = vsel %vm215_vm2, %v212_v20, %v214_v19  ;;  %v376_v59 = vld [vmem:[#allocation6 + $0x7] ss:$8 sm:$0xf]  ;;  %v327_v60 = vld [vmem:[#allocation6 + $0x6] ss:$8 sm:$0xf] }
  0xb7   :  { %v250_v26 = vmul.f32 %v242_v7, %v218_v22  ;;  %v248_v27 = vmul.f32 %v234_v8, %v216_v23  ;;  %v249_v28 = vmul.f32 %v238_v9, %v217_v24  ;;  %v344_v61 = vrot.slane %v327_v60, %v1560_v16 }
  0xb8   :  { %v336_v62 = vrot.slane %v327_v60, %v1558_v14  ;;  %v340_v7 = vrot.slane %v327_v60, %v1556_v11  ;;  %v381_v9 = vrot.slane %v376_v59, %v1562_v18  ;;  %v393_v12 = vrot.slane %v376_v59, %v1560_v16 }
  0xb9   :  { %v262_v31 = vpop.permute.xlu1 %261  ;;  %v260_v32 = vpop.permute.xlu0 %259  ;;  %v1250_v33 = vpack.c.bf16 %v248_v27, %v199_v17  ;;  %v1266_v34 = vpack.c.bf16 %v250_v26, %v201_v15  ;;  %v1268_v35 = vpack.c.bf16 %v249_v28, %v200_v25  ;;  %v385_v13 = vrot.slane %v376_v59, %v1558_v14 }
  0xba   :  { %v268_v39 = vsel %vm267_vm4, %v260_v32, %v262_v31  ;;  %v389_v15 = vrot.slane %v376_v59, %v1556_v11  ;;  %v332_v17 = vrot.slane %v327_v60, %v1562_v18 }
  0xbb   :  { %1251 = vmatprep.subr.bf16.mxu0 %v1250_v33  ;;  %1267 = vmatprep.subr.bf16.mxu1 %v1266_v34  ;;  %v300_v44 = vmul.f32 %v283_v36, %v268_v39 }
  0xbc   :  { %1253 = vmatpush1.bf16.msra.mxu0 %v1252_v37  ;;  %1269 = vmatpush1.bf16.msra.mxu1 %v1268_v35  ;;  %v425_v35 = vld [vmem:[#allocation6 + $0x20] ss:$8 sm:$0xf] }
  0xbd   :  { %v266_v42 = vpop.permute.xlu1 %265  ;;  %v264_v43 = vpop.permute.xlu0 %263  ;;  %v1256_v56 = vpack.c.bf16 %v300_v44, %v1489_v3  ;;  %v430_v44 = vrot.slane %v425_v35, %v1562_v18 }
  0xbe   :  { %v276_v45 = vsel %vm267_vm4, %v266_v42, %v260_v32  ;;  %v269_v46 = vsel %vm267_vm4, %v262_v31, %v264_v43  ;;  %v270_v47 = vsel %vm267_vm4, %v264_v43, %v266_v42  ;;  %v434_v42 = vrot.slane %v425_v35, %v1558_v14 }
  0xbf   :  { %v303_v48 = vmul.f32 %v295_v38, %v276_v45  ;;  %v301_v49 = vmul.f32 %v287_v40, %v269_v46  ;;  %v302_v50 = vmul.f32 %v291_v41, %v270_v47  ;;  %v442_v41 = vrot.slane %v425_v35, %v1560_v16 }
  0xc0   :  { %v438_v43 = vrot.slane %v425_v35, %v1556_v11 }
  0xc1   :  { %v311_v51 = vpop.permute.xlu1 %310  ;;  %v309_v52 = vpop.permute.xlu0 %308  ;;  %v1254_v53 = vpack.c.bf16 %v301_v49, %v1481_v1  ;;  %v1270_v54 = vpack.c.bf16 %v303_v48, %v1479_v0  ;;  %v1272_v55 = vpack.c.bf16 %v302_v50, %v1487_v2 }
  0xc2   :  { %v317_v20 = vsel %vm316_vm6, %v309_v52, %v311_v51 }
  0xc3   :  { %1255 = vmatprep.subr.bf16.mxu0 %v1254_v53  ;;  %1271 = vmatprep.subr.bf16.mxu1 %v1270_v54  ;;  %v349_v33 = vmul.f32 %v332_v17, %v317_v20 }
  0xc4   :  { %1257 = vmatpush1.bf16.msra.mxu0 %v1256_v56  ;;  %1273 = vmatpush1.bf16.msra.mxu1 %v1272_v55  ;;  %v54_v55 = vld [vmem:[%s1845_s2] sm:$0xff] }
  0xc5   :  { %v315_v57 = vpop.permute.xlu1 %314  ;;  %v313_v58 = vpop.permute.xlu0 %312 }
  0xc6   :  { %v325_v6 = vsel %vm316_vm6, %v315_v57, %v309_v52  ;;  %v318_v8 = vsel %vm316_vm6, %v311_v51, %v313_v58  ;;  %v319_v19 = vsel %vm316_vm6, %v313_v58, %v315_v57 }
  0xc7   :  { %v352_v21 = vmul.f32 %v344_v61, %v325_v6  ;;  %v350_v22 = vmul.f32 %v336_v62, %v318_v8  ;;  %v351_v29 = vmul.f32 %v340_v7, %v319_v19 }
  0xc9   :  { %v360_v63 = vpop.permute.xlu1 %359  ;;  %v358_v5 = vpop.permute.xlu0 %357 }
  0xca   :  { %v366_v10 = vsel %vm365_vm5, %v358_v5, %v360_v63 }
  0xcb   :  { %v398_v25 = vmul.f32 %v381_v9, %v366_v10  ;;  %v647_v9 = vld [vmem:[%s1848_s5] sm:$0xff] }
  0xcd   :  { %v364_v23 = vpop.permute.xlu1 %363  ;;  %v362_v24 = vpop.permute.xlu0 %361  ;;  %v1260_v40 = vpack.c.bf16 %v398_v25, %v349_v33 }
  0xce   :  { %v374_v26 = vsel %vm365_vm5, %v364_v23, %v358_v5  ;;  %v367_v27 = vsel %vm365_vm5, %v360_v63, %v362_v24  ;;  %v368_v28 = vsel %vm365_vm5, %v362_v24, %v364_v23  ;;  %v669_v24 = vld [vmem:[#allocation6] ss:$8 sm:$0xf] }
  0xcf   :  { %v401_v30 = vmul.f32 %v393_v12, %v374_v26  ;;  %v399_v31 = vmul.f32 %v385_v13, %v367_v27  ;;  %v400_v32 = vmul.f32 %v389_v15, %v368_v28  ;;  %v716_v27 = vld [vmem:[#allocation6 + $0x1] ss:$8 sm:$0xf]  ;;  %v678_v28 = vrot.slane %v669_v24, %v1558_v14 }
  0xd1   :  { %v409_v34 = vpop.permute.xlu1 %408  ;;  %v407_v36 = vpop.permute.xlu0 %406  ;;  %v1258_v37 = vpack.c.bf16 %v399_v31, %v350_v22  ;;  %v1274_v38 = vpack.c.bf16 %v401_v30, %v352_v21  ;;  %v1276_v39 = vpack.c.bf16 %v400_v32, %v351_v29  ;;  %v725_v29 = vrot.slane %v716_v27, %v1558_v14 }
  0xd2   :  { %v415_v45 = vsel %vm414_vm7, %v407_v36, %v409_v34 }
  0xd3   :  { %1259 = vmatprep.subr.bf16.mxu0 %v1258_v37  ;;  %1275 = vmatprep.subr.bf16.mxu1 %v1274_v38  ;;  %v447_v54 = vmul.f32 %v430_v44, %v415_v45  ;;  %v729_v45 = vrot.slane %v716_v27, %v1556_v11 }
  0xd4   :  { %1261 = vmatpush1.bf16.msra.mxu0 %v1260_v40  ;;  %1277 = vmatpush1.bf16.msra.mxu1 %v1276_v39  ;;  %v682_v40 = vrot.slane %v669_v24, %v1556_v11 }
  0xd5   :  { %v413_v46 = vpop.permute.xlu1 %412  ;;  %v411_v47 = vpop.permute.xlu0 %410 }
  0xd6   :  { %v423_v48 = vsel %vm414_vm7, %v413_v46, %v407_v36  ;;  %v416_v49 = vsel %vm414_vm7, %v409_v34, %v411_v47  ;;  %v417_v50 = vsel %vm414_vm7, %v411_v47, %v413_v46  ;;  %v1730_v36 = vld [vmem:[#allocation6 + $0x2] ss:$8 sm:$0xf]  ;;  %v674_v46 = vrot.slane %v669_v24, %v1562_v18 }
  0xd7   :  { %v450_v51 = vmul.f32 %v442_v41, %v423_v48  ;;  %v448_v52 = vmul.f32 %v434_v42, %v416_v49  ;;  %v449_v53 = vmul.f32 %v438_v43, %v417_v50  ;;  %v721_v41 = vrot.slane %v716_v27, %v1562_v18  ;;  %v1737_v43 = vld [vmem:[#allocation6 + $0x3] ss:$8 sm:$0xf] }
  0xd8   :  { %v733_v42 = vrot.slane %v716_v27, %v1560_v16  ;;  %v686_v47 = vrot.slane %v669_v24, %v1560_v16  ;;  %v768_v50 = vrot.slane %v1730_v36, %v1562_v18  ;;  %v819_v27 = vrot.slane %v1737_v43, %v1558_v14 }
  0xd9   :  { %516 = vmatprep.subr.mxu0 %v448_v52  ;;  %587 = vmatprep.subr.mxu1 %v450_v51  ;;  %v780_v51 = vrot.slane %v1730_v36, %v1560_v16  ;;  %v772_v52 = vrot.slane %v1730_v36, %v1558_v14 }
  0xda   :  { %517 = vmatpush1.msra.mxu0 %v447_v54  ;;  %588 = vmatpush1.msra.mxu1 %v449_v53  ;;  %v776_v53 = vrot.slane %v1730_v36, %v1556_v11 }
  0xdb   :  { %1242 = vmatmul.mubr.msk.f32.vlgmr.msra.gmra.mrb[0].mxu0 %vm496_vm8, %v54_v55  ;;  %1243 = vmatmul.mubr.msk.f32.vlgmr.msra.gmra.mrb[0].mxu1 %vm496_vm8, %v54_v55 }
  0xdc   :  { %1140 = vmatprep.mubr.f32.mxu0 %v1409_v4  ;;  %1211 = vmatprep.mubr.f32.mxu1 %v1409_v4 }
  0xe6   :  { %v494_v56 = vpop.permute.xlu0 %493 }
 0x1ae   :  { %v566_v57 = vpop.f32.mrb[0].mxu0  ;;  %v637_v58 = vpop.f32.mrb[0].mxu1 }
 0x1af   :  { %v567_v59 = vadd.f32 %v566_v57, %v494_v56  ;;  %v568_v60 = vpop.f32.mrb[1].mxu0  ;;  %v639_v61 = vpop.f32.mrb[1].mxu1  ;;  %v638_v62 = vadd.f32 %v637_v58, %v494_v56  ;;  %v827_v57 = vrot.slane %v1737_v43, %v1560_v16  ;;  %v861_v58 = vld [vmem:[#allocation6 + $0x5] ss:$8 sm:$0xf] }
 0x1b0   :  { %v569_v4 = vadd.f32 %v568_v60, %v494_v56  ;;  %v640_v7 = vadd.f32 %v639_v61, %v494_v56  ;;  %v815_v56 = vrot.slane %v1737_v43, %v1562_v18  ;;  %v866_v24 = vrot.slane %v861_v58, %v1562_v18 }
 0x1b1   :  { %v1639_v63 = vmax.f32 %v567_v59, 0.0  ;;  %v1645_v5 = vmax.f32 %v638_v62, 0.0 }
 0x1b2   :  { %v1659_v6 = vmax.f32 %v569_v4, 0.0  ;;  %v1665_v8 = vmax.f32 %v640_v7, 0.0 }
 0x1b3   :  { %844 = vrot.lane.b32.xlu0 %v1639_v63, %s1406_s25  ;;  %655 = vrot.lane.b32.xlu1 %v1639_v63, %s1402_s22 }
 0x1b7   :  { %848 = vrot.lane.b32.xlu0 %v1645_v5, %s1406_s25  ;;  %659 = vrot.lane.b32.xlu1 %v1645_v5, %s1402_s22 }
 0x1bb   :  { %891 = vrot.lane.b32.xlu0 %v1639_v63, %s1407_s26  ;;  %702 = vrot.lane.b32.xlu1 %v1639_v63, %s1403_s1 }
 0x1bf   :  { %895 = vrot.lane.b32.xlu0 %v1645_v5, %s1407_s26  ;;  %706 = vrot.lane.b32.xlu1 %v1645_v5, %s1403_s1 }
 0x1c3   :  { %657 = vrot.lane.b32.xlu0 %v1659_v6, %s1402_s22  ;;  %749 = vrot.lane.b32.xlu1 %v1639_v63, %s1404_s23 }
 0x1c7   :  { %699 = vrot.lane.b32.xlu0 %v1665_v8, %s1403_s1  ;;  %753 = vrot.lane.b32.xlu1 %v1645_v5, %s1404_s23 }
 0x1cb   :  { %704 = vrot.lane.b32.xlu0 %v1659_v6, %s1403_s1  ;;  %796 = vrot.lane.b32.xlu1 %v1639_v63, %s1405_s24 }
 0x1cf   :  { %746 = vrot.lane.b32.xlu0 %v1665_v8, %s1404_s23  ;;  %800 = vrot.lane.b32.xlu1 %v1645_v5, %s1405_s24 }
 0x1d3   :  { %751 = vrot.lane.b32.xlu0 %v1659_v6, %s1404_s23  ;;  %649 = vrot.lane.b32.xlu1 %v1665_v8, %s1402_s22 }
 0x1d7   :  { %793 = vrot.lane.b32.xlu0 %v1665_v8, %s1405_s24  ;;  %846 = vrot.lane.b32.xlu1 %v1659_v6, %s1406_s25 }
 0x1db   :  { %798 = vrot.lane.b32.xlu0 %v1659_v6, %s1405_s24  ;;  %850 = vrot.lane.b32.xlu1 %v1665_v8, %s1406_s25 }
 0x1df   :  { %938 = vrot.lane.b32.xlu0 %v1639_v63, %s1408_s27  ;;  %893 = vrot.lane.b32.xlu1 %v1659_v6, %s1407_s26 }
 0x1e3   :  { %942 = vrot.lane.b32.xlu0 %v1645_v5, %s1408_s27  ;;  %897 = vrot.lane.b32.xlu1 %v1665_v8, %s1407_s26 }
 0x1e7   :  { %985 = vrot.lane.b32.xlu0 %v1639_v63, %s1411_s28  ;;  %940 = vrot.lane.b32.xlu1 %v1659_v6, %s1408_s27 }
 0x1eb   :  { %989 = vrot.lane.b32.xlu0 %v1645_v5, %s1411_s28  ;;  %944 = vrot.lane.b32.xlu1 %v1665_v8, %s1408_s27 }
 0x1ef   :  { %1070 = vperm.xlu0 %1325, %v647_v9   ;;  %987 = vrot.lane.b32.xlu1 %v1659_v6, %s1411_s28 }
 0x1f3   :  { %991 = vrot.lane.b32.xlu1 %v1665_v8, %s1411_s28 }
 0x225   :  { %v1714_v10 = vpop.permute.xlu0 %844  ;;  %v656_v12 = vpop.permute.xlu1 %655 }
 0x229   :  { %v1716_v13 = vpop.permute.xlu0 %848  ;;  %v660_v15 = vpop.permute.xlu1 %659 }
 0x22d   :  { %v1718_v17 = vpop.permute.xlu0 %891  ;;  %v703_v19 = vpop.permute.xlu1 %702 }
 0x231   :  { %v1720_v20 = vpop.permute.xlu0 %895  ;;  %v707_v21 = vpop.permute.xlu1 %706 }
 0x235   :  { %v658_v22 = vpop.permute.xlu0 %657  ;;  %v1722_v23 = vpop.permute.xlu1 %749 }
 0x236   :  { %v661_v30 = vsel %vm69_vm0, %v656_v12, %v658_v22  ;;  %v662_v59 = vsel %vm69_vm0, %v658_v22, %v660_v15 }
 0x237   :  { %v692_v34 = vmul.f32 %v678_v28, %v661_v30  ;;  %v693_v28 = vmul.f32 %v682_v40, %v662_v59 }
 0x239   :  { %v700_v25 = vpop.permute.xlu0 %699  ;;  %v754_v26 = vpop.permute.xlu1 %753 }
 0x23a   :  { %v715_v44 = vsel %vm117_vm1, %v700_v25, %v703_v19  ;;  %v710_v48 = vsel %vm117_vm1, %v707_v21, %v700_v25  ;;  %v870_v25 = vrot.slane %v861_v58, %v1558_v14 }
 0x23b   :  { %v738_v60 = vmul.f32 %v721_v41, %v715_v44  ;;  %v741_v4 = vmul.f32 %v733_v42, %v710_v48  ;;  %v878_v41 = vrot.slane %v861_v58, %v1560_v16 }
 0x23d   :  { %v705_v31 = vpop.permute.xlu0 %704  ;;  %v1727_v32 = vpop.permute.xlu1 %796 }
 0x23e   :  { %v708_v33 = vsel %vm117_vm1, %v703_v19, %v705_v31  ;;  %v709_v49 = vsel %vm117_vm1, %v705_v31, %v707_v21 }
 0x23f   :  { %v739_v35 = vmul.f32 %v725_v29, %v708_v33  ;;  %v740_v7 = vmul.f32 %v729_v45, %v709_v49  ;;  %v874_v45 = vrot.slane %v861_v58, %v1556_v11 }
 0x241   :  { %v747_v37 = vpop.permute.xlu0 %746  ;;  %v1732_v38 = vpop.permute.xlu1 %800  ;;  %v1278_v39 = vpack.c.bf16 %v739_v35, %v692_v34  ;;  %v823_v35 = vrot.slane %v1737_v43, %v1556_v11  ;;  %v1296_v36 = vpack.c.bf16 %v740_v7, %v693_v28 }
 0x242   :  { %v757_v21 = vsel %vm166_vm3, %v754_v26, %v747_v37  ;;  %v762_v42 = vsel %vm166_vm3, %v747_v37, %v1722_v23 }
 0x243   :  { %1279 = vmatprep.subr.bf16.mxu0 %v1278_v39  ;;  %v788_v39 = vmul.f32 %v780_v51, %v757_v21  ;;  %v785_v58 = vmul.f32 %v768_v50, %v762_v42 }
 0x245   :  { %v752_v54 = vpop.permute.xlu0 %751  ;;  %v650_v55 = vpop.permute.xlu1 %649 }
 0x246   :  { %v663_v61 = vsel %vm69_vm0, %v660_v15, %v650_v55  ;;  %v668_v62 = vsel %vm69_vm0, %v650_v55, %v656_v12  ;;  %v755_v22 = vsel %vm166_vm3, %v1722_v23, %v752_v54  ;;  %v756_v31 = vsel %vm166_vm3, %v752_v54, %v754_v26 }
 0x247   :  { %v691_v9 = vmul.f32 %v674_v46, %v668_v62  ;;  %v694_v19 = vmul.f32 %v686_v47, %v663_v61  ;;  %v786_v44 = vmul.f32 %v772_v52, %v755_v22  ;;  %v787_v46 = vmul.f32 %v776_v53, %v756_v31 }
 0x249   :  { %v1280_v15 = vpack.c.bf16 %v738_v60, %v691_v9  ;;  %v794_v29 = vpop.permute.xlu0 %793  ;;  %v847_v12 = vpop.permute.xlu1 %846  ;;  %v1294_v30 = vpack.c.bf16 %v741_v4, %v694_v19  ;;  %v955_v9 = vld [vmem:[#allocation6 + $0x7] ss:$8 sm:$0xf] }
 0x24a   :  { %v804_v33 = vsel %vm215_vm2, %v1732_v38, %v794_v29  ;;  %v809_v34 = vsel %vm215_vm2, %v794_v29, %v1727_v32  ;;  %v853_v26 = vsel %vm267_vm4, %v847_v12, %v1716_v13  ;;  %v852_v43 = vsel %vm267_vm4, %v1714_v10, %v847_v12 }
 0x24b   :  { %v835_v40 = vmul.f32 %v827_v57, %v804_v33  ;;  %1281 = vmatpush1.bf16.msra.mxu0 %v1280_v15  ;;  %1295 = vmatprep.subr.bf16.mxu1 %v1294_v30  ;;  %v832_v47 = vmul.f32 %v815_v56, %v809_v34  ;;  %v884_v53 = vmul.f32 %v870_v25, %v853_v26 }
 0x24c   :  { %1297 = vmatpush1.bf16.msra.mxu1 %v1296_v36  ;;  %v883_v7 = vmul.f32 %v866_v24, %v852_v43  ;;  %v960_v24 = vrot.slane %v955_v9, %v1562_v18  ;;  %v968_v30 = vrot.slane %v955_v9, %v1556_v11  ;;  %v972_v31 = vrot.slane %v955_v9, %v1560_v16 }
 0x24d   :  { %v799_v48 = vpop.permute.xlu0 %798  ;;  %v851_v49 = vpop.permute.xlu1 %850  ;;  %v1298_v51 = vpack.c.bf16 %v835_v40, %v788_v39  ;;  %v1002_v40 = vld [vmem:[#allocation6 + $0x20] ss:$8 sm:$0xf] }
 0x24e   :  { %v802_v54 = vsel %vm215_vm2, %v1727_v32, %v799_v48  ;;  %v803_v23 = vsel %vm215_vm2, %v799_v48, %v1732_v38  ;;  %v854_v37 = vsel %vm267_vm4, %v1716_v13, %v851_v49  ;;  %v860_v52 = vsel %vm267_vm4, %v851_v49, %v1714_v10  ;;  %v908_v10 = vld [vmem:[#allocation6 + $0x6] ss:$8 sm:$0xf] }
 0x24f   :  { %v833_v55 = vmul.f32 %v819_v27, %v802_v54  ;;  %v834_v56 = vmul.f32 %v823_v35, %v803_v23  ;;  %v886_v57 = vmul.f32 %v878_v41, %v860_v52  ;;  %1299 = vmatprep.subr.bf16.mxu1 %v1298_v51  ;;  %v885_v60 = vmul.f32 %v874_v45, %v854_v37 }
 0x250   :  { %v1284_v38 = vpack.c.bf16 %v832_v47, %v785_v58  ;;  %v1286_v13 = vpack.c.bf16 %v884_v53, %v1659_v6  ;;  %v1288_v25 = vpack.c.bf16 %v883_v7, %v1639_v63  ;;  %v913_v27 = vrot.slane %v908_v10, %v1562_v18  ;;  %v646_v58 = vld [vmem:[%s1847_s4] sm:$0xff]  ;;  %s1412_s4 = smov [#allocation8]  }
 0x251   :  { %v1300_v59 = vpack.c.bf16 %v834_v56, %v787_v46  ;;  %v939_v61 = vpop.permute.xlu0 %938  ;;  %v894_v62 = vpop.permute.xlu1 %893  ;;  %v1282_v32 = vpack.c.bf16 %v833_v55, %v786_v44  ;;  %v1302_v4 = vpack.c.bf16 %v886_v57, %v1665_v8  ;;  %v1304_v19 = vpack.c.bf16 %v885_v60, %v1645_v5  ;;  %s1232_s10 = sshll.u32 %s1412_s4, 4  ;;  %s1233_s10 = int_to_ptr.vmem [resolvable:$true] %s1232_s10 }
 0x252   :  { %v917_v8 = vrot.slane %v908_v10, %v1558_v14  ;;  %v964_v6 = vrot.slane %v955_v9, %v1558_v14  ;;  %v899_v28 = vsel %vm316_vm6, %v1718_v17, %v894_v62  ;;  %v900_v5 = vsel %vm316_vm6, %v894_v62, %v1720_v20  ;;  %s1370_s11 = scalar_lea.vmem %s1233_s10, 512  ;;  %p1375_p3 = scmp.lt.s32.totalorder %s1233_s10, %s1233_s10 }
 0x253   :  { %1283 = vmatprep.subr.bf16.mxu0 %v1282_v32  ;;  %1301 = vmatpush1.bf16.msra.mxu1 %v1300_v59  ;;  %v921_v22 = vrot.slane %v908_v10, %v1556_v11  ;;  %v925_v63 = vrot.slane %v908_v10, %v1560_v16  ;;  %v930_v33 = vmul.f32 %v913_v27, %v899_v28  ;;  %p1371_p2 = scmp.ne.s32.totalorder %s1233_s10, %s1370_s11  ;;  %p1376_p4 = scmp.lt.s32.totalorder %s1370_s11, %s1370_s11 }
 0x254   :  { %1285 = vmatpush1.bf16.msra.mxu0 %v1284_v38  ;;  %1303 = vmatprep.subr.bf16.mxu1 %v1302_v4  ;;  %v931_v34 = vmul.f32 %v917_v8, %v900_v5  ;;  %v1007_v43 = vrot.slane %v1002_v40, %v1562_v18  ;;  %v1011_v48 = vrot.slane %v1002_v40, %v1558_v14 }
 0x255   :  { %v943_v50 = vpop.permute.xlu0 %942  ;;  %1287 = vmatprep.subr.bf16.mxu0 %v1286_v13  ;;  %v898_v21 = vpop.permute.xlu1 %897  ;;  %v1015_v18 = vrot.slane %v1002_v40, %v1556_v11  ;;  %v1019_v14 = vrot.slane %v1002_v40, %v1560_v16  ;;  %p1377_p5 = por %p1376_p4, %p1375_p3 }
 0x256   :  { %v901_v41 = vsel %vm316_vm6, %v1720_v20, %v898_v21  ;;  %v907_v42 = vsel %vm316_vm6, %v898_v21, %v1718_v17 }
 0x257   :  { %1305 = vmatpush1.bf16.msra.mxu1 %v1304_v19  ;;  %v932_v49 = vmul.f32 %v921_v22, %v901_v41  ;;  %v933_v51 = vmul.f32 %v925_v63, %v907_v42  ;;  %p1378_p6 = pnand %p1377_p5, %p1371_p2 }
 0x258   :  { %1289 = vmatpush1.bf16.msra.mxu0 %v1288_v25 }
 0x259   :  { %v941_v15 = vpop.permute.xlu1 %940  ;;  %v986_v35 = vpop.permute.xlu0 %985 }
 0x25a   :  { %v946_v29 = vsel %vm365_vm5, %v939_v61, %v941_v15  ;;  %v947_v12 = vsel %vm365_vm5, %v941_v15, %v943_v50 }
 0x25b   :  { %v977_v36 = vmul.f32 %v960_v24, %v946_v29  ;;  %v978_v39 = vmul.f32 %v964_v6, %v947_v12 }
 0x25d   :  { %v1292_v44 = vpack.c.bf16 %v977_v36, %v930_v33  ;;  %v945_v26 = vpop.permute.xlu1 %944  ;;  %v1290_v45 = vpack.c.bf16 %v978_v39, %v931_v34  ;;  %v990_v20 = vpop.permute.xlu0 %989 }
 0x25e   :  { %v948_v46 = vsel %vm365_vm5, %v943_v50, %v945_v26  ;;  %v954_v47 = vsel %vm365_vm5, %v945_v26, %v939_v61 }
 0x25f   :  { %v979_v54 = vmul.f32 %v968_v30, %v948_v46  ;;  %v980_v23 = vmul.f32 %v972_v31, %v954_v47  ;;  %1291 = vmatprep.subr.bf16.mxu0 %v1290_v45 }
 0x260   :  { %1293 = vmatpush1.bf16.msra.mxu0 %v1292_v44 }
 0x261   :  { %v1308_v37 = vpack.c.bf16 %v979_v54, %v932_v49  ;;  %v988_v17 = vpop.permute.xlu1 %987  ;;  %v1306_v52 = vpack.c.bf16 %v980_v23, %v933_v51 }
 0x262   :  { %v993_v53 = vsel %vm414_vm7, %v986_v35, %v988_v17  ;;  %v994_v55 = vsel %vm414_vm7, %v988_v17, %v990_v20 }
 0x263   :  { %v1024_v56 = vmul.f32 %v1007_v43, %v993_v53  ;;  %v1025_v57 = vmul.f32 %v1011_v48, %v994_v55  ;;  %1307 = vmatprep.subr.bf16.mxu1 %v1306_v52 }
 0x264   :  { %1309 = vmatpush1.bf16.msra.mxu1 %v1308_v37 }
 0x265   :  { %1092 = vmatprep.subr.mxu0 %v1025_v57  ;;  %v992_v59 = vpop.permute.xlu1 %991 }
 0x266   :  { %v995_v60 = vsel %vm414_vm7, %v990_v20, %v992_v59  ;;  %v1001_v61 = vsel %vm414_vm7, %v992_v59, %v986_v35  ;;  %1093 = vmatpush1.msra.mxu0 %v1024_v56 }
 0x267   :  { %v1026_v62 = vmul.f32 %v1015_v18, %v995_v60  ;;  %v1027_v32 = vmul.f32 %v1019_v14, %v1001_v61  ;;  %1244 = vmatmul.mubr.msk.f32.vlgmr.msra.gmra.mrb[2].mxu0 %vm496_vm8, %v646_v58 }
 0x269   :  { %1163 = vmatprep.subr.mxu1 %v1027_v32 }
 0x26a   :  { %1164 = vmatpush1.msra.mxu1 %v1026_v62 }
 0x26b   :  { %1245 = vmatmul.mubr.msk.f32.vlgmr.msra.gmra.mrb[2].mxu1 %vm496_vm8, %v646_v58 }
 0x26e   :  { %v1071_v11 = vpop.permute.xlu0 %1070 }
 0x33a   :  { %v1142_v16 = vpop.f32.mrb[2].mxu0 }
 0x33b   :  { %v1143_v4 = vadd.f32 %v1142_v16, %v1071_v11  ;;  %v1144_v38 = vpop.f32.mrb[3].mxu0 }
 0x33c   :  { %v1145_v7 = vadd.f32 %v1144_v38, %v1071_v11 }
 0x33d   :  { %v1218_v13 = vadd.f32 %v1143_v4, %v1489_v3 }
 0x33e   :  { %v1219_v10 = vadd.f32 %v1145_v7, %v1481_v1  ;;  %v1213_v9 = vpop.f32.mrb[2].mxu1 }
 0x33f   :  { %1222 = vst [vmem:[#allocation8] sm:$0xff] %v1218_v13  ;;  %v1214_v19 = vadd.f32 %v1213_v9, %v1071_v11  ;;  %v1215_v50 = vpop.f32.mrb[3].mxu1 }
 0x340   :  { %1223 = vst [vmem:[#allocation8 + $0x8] sm:$0xff] %v1219_v10  ;;  %v1216_v21 = vadd.f32 %v1215_v50, %v1071_v11 }
 0x341   :  { %v1220_v25 = vadd.f32 %v1214_v19, %v1487_v2 }
 0x342   :  { %v1221_v27 = vadd.f32 %v1216_v21, %v1479_v0 }
 0x343   :  { %1224 = vst [vmem:[#allocation8 + $0x10] sm:$0xff] %v1220_v25 }
 0x344   :  { %1225 = vst [vmem:[#allocation8 + $0x18] sm:$0xff] %v1221_v27 }
 0x345   :  { %1381 = shalt.err (!%p1378_p6)
}
 0x346   :  { %s1382_s14 = scalar_lea.hbm %s1849_s6, 512 }
 0x347   :  { %p1383_p7 = scmp.ne.s32.totalorder %s1849_s6, %s1382_s14  ;;  %p1386_p8 = scmp.lt.u32.totalorder %s1382_s14, %s1849_s6 }
 0x349   :  { %p1388_p9 = pnand %p1386_p8, %p1383_p7 }
 0x34b   :  { %1391 = shalt.err (!%p1388_p9)
}
 0x34c   :  { %1235 = dma.vmem_to_hbm [thread:$0]  %s1233_s10, 512, %s1849_s6, [#allocation5]  }
 0x34d   :  { %1396 = dma.done.wait [#allocation5], 512  }
 0x34e   :  { %1397 = vsyncadd [#allocation5], 4294966784 }
 0x34f   :  { %1239 = vsyncpa [#allocation4], 1 }
 0x350   :  { %1240 = vsyncpa [#allocation7], 1 }
 0x351   :  { %1241 = vsyncpa [#allocation5], 1 }

</bundles_post_ra>
